<compile_context>
chip_gen: v6e
topology: v6e:2x2x1
jax: 0.10.0
libtpu: 0.0.40
codegen_flags: <defaults>
</compile_context>

<pallas_src>
import functools

import jax
import jax.numpy as jnp
from jax import lax
from jax.experimental import pallas as pl
from jax.experimental.pallas import tpu as pltpu


def _round_up(x, m):
    return ((x + m - 1) // m) * m


def _pmf_kernel(uidx_ref, iidx_ref, tab_ref, o_ref, *, nu_p, faug_p):
    # uidx_ref/iidx_ref: (1, TB) int32       -- batch tile of indices (lanes)
    # tab_ref:           (4*Fp, NUp+NIp) bf16 -- fused block-diag two-limb table
    # o_ref:             (1, TB) f32          -- lane-dense predictions
    kp = tab_ref.shape[1]          # nu_p + ni_p
    tb = o_ref.shape[1]

    # Stacked one-hot, exact in bf16: exactly one hit in the user half
    # (rows [0, nu_p)) and one in the item half (rows [nu_p, kp)).
    row = lax.broadcasted_iota(jnp.int32, (kp, tb), 0)
    hot = ((row == uidx_ref[...]) |
           (row == (iidx_ref[...] + nu_p))).astype(jnp.bfloat16)

    # Single bf16 MXU pass gathers user-hi, item-hi, user-lo, item-lo rows.
    g = jnp.dot(tab_ref[...], hot,
                preferred_element_type=jnp.float32)        # (4*Fp, TB)

    u_t = g[0 * faug_p:1 * faug_p] + g[2 * faug_p:3 * faug_p]   # hi + lo limbs
    i_t = g[1 * faug_p:2 * faug_p] + g[3 * faug_p:4 * faug_p]

    # Factor (sublane) reduction; biases already folded in as two factors.
    o_ref[...] = jnp.sum(u_t * i_t, axis=0, keepdims=True)      # (1, TB)


def prepare_pmf_tables(user_emb, item_emb, ub, ib):
    """Build the fused bf16 two-limb block-diagonal gather table ONCE.

    Returns (table, nu_p, faug_p); nu_p/faug_p are static Python ints.
    Call this outside the per-step path and reuse the result across forwards.
    """
    n_users, n_factors = user_emb.shape
    n_items = item_emb.shape[0]
    faug = n_factors + 2
    faug_p = _round_up(faug, 8)          # sublane-align the factor axis
    nu_p = _round_up(n_users, 128)       # lane-align the table row counts
    ni_p = _round_up(n_items, 128)

    # [emb | ub | 1] . [emb | 1 | ib] = sum(u*i) + ub + ib
    u_aug = jnp.concatenate(
        [user_emb, ub.reshape(n_users, 1), jnp.ones((n_users, 1), user_emb.dtype)],
        axis=1).astype(jnp.float32)                          # (NU, F+2)
    i_aug = jnp.concatenate(
        [item_emb, jnp.ones((n_items, 1), item_emb.dtype), ib.reshape(n_items, 1)],
        axis=1).astype(jnp.float32)                          # (NI, F+2)

    def limbs(x_f32):
        hi = x_f32.astype(jnp.bfloat16)
        lo = (x_f32 - hi.astype(jnp.float32)).astype(jnp.bfloat16)
        return hi, lo

    u_hi, u_lo = limbs(u_aug.T)   # (F+2, NU)
    i_hi, i_lo = limbs(i_aug.T)   # (F+2, NI)

    tab = jnp.zeros((4 * faug_p, nu_p + ni_p), jnp.bfloat16)
    tab = tab.at[0 * faug_p:0 * faug_p + faug, :n_users].set(u_hi)
    tab = tab.at[1 * faug_p:1 * faug_p + faug, nu_p:nu_p + n_items].set(i_hi)
    tab = tab.at[2 * faug_p:2 * faug_p + faug, :n_users].set(u_lo)
    tab = tab.at[3 * faug_p:3 * faug_p + faug, nu_p:nu_p + n_items].set(i_lo)
    return tab, nu_p, faug_p


@functools.partial(jax.jit, static_argnames=("nu_p", "faug_p", "tile_b"))
def pmf_forward_tables(users_index, items_index, tab, *, nu_p, faug_p,
                       tile_b=1024):
    """PMF prediction from a prepared table. Handles 1-D and 0-d indices."""
    scalar_input = users_index.ndim == 0
    u_idx = jnp.atleast_1d(users_index).astype(jnp.int32)
    i_idx = jnp.atleast_1d(items_index).astype(jnp.int32)
    B = u_idx.shape[0]

    # Batch tile: multiple of 128.  For B > 128, cap so the grid has >= 2
    # steps -> the ("parallel",) axis shards across v7x's 2 TensorCores.
    b128 = _round_up(B, 128)
    tb = min(tile_b, b128)
    if b128 > 128:
        tb = min(tb, _round_up((b128 + 1) // 2, 128))
    tb = _round_up(tb, 128)
    b_pad = _round_up(B, tb)

    # Padded tail indices are 0 (a valid row); the tail is sliced off below,
    # so never reduce over the raw padded output.
    u_idx_p = jnp.zeros((1, b_pad), jnp.int32).at[0, :B].set(u_idx)
    i_idx_p = jnp.zeros((1, b_pad), jnp.int32).at[0, :B].set(i_idx)

    rows, kp = tab.shape
    kernel = functools.partial(_pmf_kernel, nu_p=nu_p, faug_p=faug_p)

    out = pl.pallas_call(
        kernel,
        out_shape=jax.ShapeDtypeStruct((1, b_pad), jnp.float32),
        grid_spec=pltpu.PrefetchScalarGridSpec(
            num_scalar_prefetch=0,
            grid=(b_pad // tb,),
            in_specs=[
                pl.BlockSpec((1, tb), lambda b: (0, b)),       # user indices
                pl.BlockSpec((1, tb), lambda b: (0, b)),       # item indices
                pl.BlockSpec((rows, kp), lambda b: (0, 0)),    # fused table (resident)
            ],
            out_specs=pl.BlockSpec((1, tb), lambda b: (0, b)),
        ),
        compiler_params=pltpu.CompilerParams(
            dimension_semantics=("parallel",),
        ),
    )(u_idx_p, i_idx_p, tab)

    result = out[0, :B]
    if scalar_input:
        result = result[0]
    return result


def pmf_forward(users_index, items_index, user_emb, item_emb, ub, ib,
                tile_b=1024):
    """Convenience one-shot API (re-prepares tables; hoist for hot loops)."""
    tab, nu_p, faug_p = prepare_pmf_tables(user_emb, item_emb, ub, ib)
    return pmf_forward_tables(users_index, items_index, tab,
                              nu_p=nu_p, faug_p=faug_p, tile_b=tile_b)


def make_params(key, n_users, n_items, n_factors):
    """Deterministic synthetic parameters (mirrors the shapes in PMF.__init__)."""
    k1, k2, k3, k4 = jax.random.split(key, 4)
    user_emb = 0.1 * jax.random.uniform(k1, (n_users, n_factors), dtype=jnp.float32)
    item_emb = 0.1 * jax.random.uniform(k2, (n_items, n_factors), dtype=jnp.float32)
    ub = jax.random.uniform(k3, (n_users, 1), minval=-0.01, maxval=0.01,
                            dtype=jnp.float32)
    ib = jax.random.uniform(k4, (n_items, 1), minval=-0.01, maxval=0.01,
                            dtype=jnp.float32)
    return user_emb, item_emb, ub, ib


if __name__ == "__main__":
    n_users, n_items, n_factors = 64, 128, 20   # n_factors=20 is the module default
    B = 300                                     # non-multiple batch -> exercises padding

    key = jax.random.PRNGKey(0)
    kparams, ku, ki = jax.random.split(key, 3)
    user_emb, item_emb, ub, ib = make_params(kparams, n_users, n_items, n_factors)

    users_index = jax.random.randint(ku, (B,), 0, n_users, dtype=jnp.int32)
    items_index = jax.random.randint(ki, (B,), 0, n_items, dtype=jnp.int32)

    # Table prep hoisted out of the per-call path (runs once).
    tab, nu_p, faug_p = prepare_pmf_tables(user_emb, item_emb, ub, ib)
    tab = jax.block_until_ready(tab)

    # Small tile for the demo so the grid still has several (parallel) steps;
    # production uses the default tile_b=1024.
    out = pmf_forward_tables(users_index, items_index, tab,
                             nu_p=nu_p, faug_p=faug_p, tile_b=128)
    out = jax.block_until_ready(out)

    # Pure-JAX reference check (batched).
    ref = (jnp.take(user_emb, users_index, 0) * jnp.take(item_emb, items_index, 0)
           ).sum(axis=1) + ub[users_index, 0] + ib[items_index, 0]
    assert out.shape == (B,)
    assert jnp.allclose(out, ref, atol=1e-5, rtol=1e-5), (out, ref)

    # Scalar (0-d) index path, matching the PyTorch branch `dim=0`.
    out_s = pmf_forward_tables(users_index[0], items_index[0], tab,
                               nu_p=nu_p, faug_p=faug_p, tile_b=128)
    out_s = jax.block_until_ready(out_s)
    assert out_s.shape == ()
    assert jnp.allclose(out_s, ref[0], atol=1e-5, rtol=1e-5), (out_s, ref[0])

    print("KERNEL_OK")
</pallas_src>

<mosaic_0001>
module attributes {stable_mosaic.version = 11 : i64} {
  func.func @_pmf_kernel(%arg0: i32, %arg1: memref<1x128xi32, #tpu.memory_space<vmem>>, %arg2: memref<1x128xi32, #tpu.memory_space<vmem>>, %arg3: memref<96x256xbf16, #tpu.memory_space<vmem>>, %arg4: memref<1x128xf32, #tpu.memory_space<vmem>>) attributes {dimension_semantics = [#tpu.dimension_semantics<parallel>], iteration_bounds = array<i64: 3>, scalar_prefetch = 0 : i64, scratch_operands = 0 : i64, tpu.core_type = #tpu.core_type<tc>, window_params = [{transform_indices = @transform_0, window_bounds = array<i64: 1, 128>}, {transform_indices = @transform_1, window_bounds = array<i64: 1, 128>}, {pipeline_mode = #tpu.pipeline_mode<synchronous>, transform_indices = @transform_2, window_bounds = array<i64: 96, 256>}, {transform_indices = @transform_3, window_bounds = array<i64: 1, 128>}]} {
    %0 = tpu.iota {dimensions = array<i32: 0>} : vector<256x128xi32>
    %c0 = arith.constant 0 : index
    %c0_0 = arith.constant 0 : index
    %1 = vector.load %arg1[%c0, %c0_0] : memref<1x128xi32, #tpu.memory_space<vmem>>, vector<1x128xi32>
    %2 = vector.broadcast %1 : vector<1x128xi32> to vector<256x128xi32>
    %3 = arith.cmpi eq, %0, %2 : vector<256x128xi32>
    %c0_1 = arith.constant 0 : index
    %c0_2 = arith.constant 0 : index
    %4 = vector.load %arg2[%c0_1, %c0_2] : memref<1x128xi32, #tpu.memory_space<vmem>>, vector<1x128xi32>
    %c128_i32 = arith.constant 128 : i32
    %5 = vector.broadcast %c128_i32 : i32 to vector<1x128xi32>
    %6 = arith.addi %4, %5 : vector<1x128xi32>
    %7 = vector.broadcast %6 : vector<1x128xi32> to vector<256x128xi32>
    %8 = arith.cmpi eq, %0, %7 : vector<256x128xi32>
    %9 = arith.ori %3, %8 : vector<256x128xi1>
    %10 = arith.extui %9 : vector<256x128xi1> to vector<256x128xi32>
    %11 = arith.sitofp %10 : vector<256x128xi32> to vector<256x128xf32>
    %12 = arith.truncf %11 : vector<256x128xf32> to vector<256x128xbf16>
    %c0_3 = arith.constant 0 : index
    %c0_4 = arith.constant 0 : index
    %13 = vector.load %arg3[%c0_3, %c0_4] : memref<96x256xbf16, #tpu.memory_space<vmem>>, vector<96x256xbf16>
    %cst = arith.constant dense<0.000000e+00> : vector<96x128xf32>
    %14 = tpu.matmul %13, %12, %cst {dimension_numbers = #tpu.dot_dimension_numbers<[1], [0], [0], [1], [0, 0, 1, 1], [], []>} : vector<96x256xbf16>, vector<256x128xbf16>, vector<96x128xf32> -> vector<96x128xf32>
    %15 = vector.extract_strided_slice %14 {offsets = [0, 0], sizes = [24, 128], strides = [1, 1]} : vector<96x128xf32> to vector<24x128xf32>
    %16 = vector.extract_strided_slice %14 {offsets = [48, 0], sizes = [24, 128], strides = [1, 1]} : vector<96x128xf32> to vector<24x128xf32>
    %17 = arith.addf %15, %16 : vector<24x128xf32>
    %18 = vector.extract_strided_slice %14 {offsets = [24, 0], sizes = [24, 128], strides = [1, 1]} : vector<96x128xf32> to vector<24x128xf32>
    %19 = vector.extract_strided_slice %14 {offsets = [72, 0], sizes = [24, 128], strides = [1, 1]} : vector<96x128xf32> to vector<24x128xf32>
    %20 = arith.addf %18, %19 : vector<24x128xf32>
    %21 = arith.mulf %17, %20 : vector<24x128xf32>
    %cst_5 = arith.constant dense<0.000000e+00> : vector<128xf32>
    %22 = vector.multi_reduction <add>, %21, %cst_5 [0] : vector<24x128xf32> to vector<128xf32>
    %23 = vector.shape_cast %22 : vector<128xf32> to vector<1x128xf32>
    %c0_6 = arith.constant 0 : index
    %c0_7 = arith.constant 0 : index
    %24 = vector.load %arg4[%c0_6, %c0_7] : memref<1x128xf32, #tpu.memory_space<vmem>>, vector<1x128xf32>
    tpu.vector_store %arg4[%c0_6, %c0_7], %23 {strides = array<i32>} : memref<1x128xf32, #tpu.memory_space<vmem>>, vector<1x128xf32>,
    return
  }
  func.func @transform_0(%arg0: i32) -> (i32, i32) {
    %c0_i32 = arith.constant 0 : i32
    %c0_i32_0 = arith.constant 0 : i32
    return %c0_i32, %arg0 : i32, i32
  }
  func.func @transform_1(%arg0: i32) -> (i32, i32) {
    %c0_i32 = arith.constant 0 : i32
    %c0_i32_0 = arith.constant 0 : i32
    return %c0_i32, %arg0 : i32, i32
  }
  func.func @transform_2(%arg0: i32) -> (i32, i32) {
    %c0_i32 = arith.constant 0 : i32
    %c0_i32_0 = arith.constant 0 : i32
    %c0_i32_1 = arith.constant 0 : i32
    return %c0_i32, %c0_i32_0 : i32, i32
  }
  func.func @transform_3(%arg0: i32) -> (i32, i32) {
    %c0_i32 = arith.constant 0 : i32
    %c0_i32_0 = arith.constant 0 : i32
    return %c0_i32, %arg0 : i32, i32
  }
}

</mosaic_0001>

<bundles_post_ra>
// kernel: pmf_forward_tables.1
= control target key start
LH: loop header
LB: loop body
LE: loop exit
PB: predicated region body
PF: predicated region fallthrough
CT: control target
= control target key end

     0   :  { %8 = vsyncpa [#allocation3], 0  ;;  %s903_s12 = smov 0   ;;  %s1078_s0 = inlined_call_operand.vmem [shape: s32[1,384], index: 0, kind: input, shape index: {}]   ;;  %s1079_s1 = inlined_call_operand.vmem [shape: s32[1,384], index: 1, kind: input, shape index: {}]   ;;  %s1080_s2 = inlined_call_operand.hbm [shape: bf16[96,256], index: 2, kind: input, shape index: {}]   ;;  %s1081_s3 = inlined_call_operand.vmem [shape: f32[1,384], index: 3, kind: output, shape index: {}]  }
   0x1 LB: > { %s647_s13 = sadd.s32 4294967295, %s877_s12   ;;  %p649_p0 = scmp.ge.s32.totalorder %s877_s12, 1  ;;  %s877_s12 = sphi %s903_s12, %s14_s12  }
   0x2   : > { %p118_p1 = scmp.lt.s32.totalorder %s877_s12, 4  ;;  %s879_s14 = smov [#allocation2]  }
   0x3   : > { %s130_s15 = sshll.u32 %s879_s14, 4  ;;  %p809_p3 = scmp.eq.s32.totalorder %s647_s13, 0  ;;  %s131_s15 = int_to_ptr.vmem [resolvable:$true] %s130_s15 }
   0x4   : > { %p911_p2 = pnand %p649_p0, %p118_p1  ;;  %s852_s17 = scalar_lea.vmem %s131_s15, 1536 }
   0x5   : > { %p853_p7 = scmp.ne.s32.totalorder %s131_s15, %s852_s17  ;;  %p860_p10 = scmp.lt.s32.totalorder %s131_s15, %s131_s15 }
   0x6   : > { %p805_p4 = pneg %p911_p2  ;;  %p861_p11 = scmp.lt.s32.totalorder %s852_s17, %s852_s17 }
   0x8   : > { %p806_p5 = pnand %p809_p3, %p805_p4  ;;  %p862_p12 = por %p861_p11, %p860_p10 }
   0xa   : > { %p843_p6 = pneg %p806_p5 }
   0xc   : > { %p855_p8 = pnand %p853_p7, %p843_p6 }
   0xe   : > { %p856_p9 = pneg %p855_p8 }
  0x10   : > { %p863_p13 = pnand %p862_p12, %p856_p9 }
  0x12   : > { %866 = shalt.err (!%p863_p13)
}
  0x13   : > { %s880_s18 = smov 128   ;;  %s881_s19 = smov 8  }
  0x14   : > { %808 = dma.hbm_to_vmem [thread:$0]  (!%p806_p5), %s1080_s2, 1536, %s131_s15, [#allocation3], %s880_s18, %s880_s18, %s881_s19  }
  0x15   : > { %158 = sbr.rel (%p911_p2) target bundleno = 325 (0x145), region = 32 }
  0x1a   : > { %872 = dma.done.wait (%p809_p3), [#allocation3], 1536  }
  0x1b   : > { %874 = vsyncadd (%p809_p3), [#allocation3], 4294965760  ;;  %p181_p0 = scmp.lt.s32.totalorder %s647_s13, 2  ;;  %v191_v0 = vlaneseq  ;;  %v825_v9 = vld [vmem:[#allocation2 + $0x4] ss:$8 sps:$4 sm:$0xff]  }
  0x1c   : > { %v828_v12 = vld [vmem:[#allocation2 + $0x34] ss:$8 sps:$4 sm:$0xff]   ;;  %515 = vmatprep.mubr.bf16.mxu0 %v825_v9  ;;  %v882_v16 = vmov 1.0|1.0   ;;  %v823_v41 = vld [vmem:[#allocation2] ss:$8 sps:$4 sm:$0xff]  }
  0x1d   : > { %s1084_s13 = smov (!%p181_p0, %s647_s13), 2  ;;  %v927_v1 = vshrl.u32 %v191_v0, 7  ;;  %539 = vmatprep.mubr.bf16.mxu1 %v828_v12  ;;  %v826_v42 = vld [vmem:[#allocation2 + $0x30] ss:$8 sps:$4 sm:$0xff]   ;;  %v829_v43 = vld [vmem:[#allocation2 + $0x14] ss:$8 sps:$4 sm:$0xff]  }
  0x1e   : > { %s183_s24 = scalar_lea.vmem %s1078_s0, %s1084_s13  ;;  %s186_s27 = scalar_lea.vmem %s1079_s1, %s1084_s13  ;;  %v831_v44 = vld [vmem:[#allocation2 + $0x44] ss:$8 sps:$4 sm:$0xff]   ;;  %v833_v45 = vld [vmem:[#allocation2 + $0x10] ss:$8 sps:$4 sm:$0xff]   ;;  %v834_v46 = vld [vmem:[#allocation2 + $0x40] ss:$8 sps:$4 sm:$0xff]  }
  0x1f   : > { %v222_v2 = vadd.s32 240, %v927_v1  ;;  %v265_v3 = vsub.s32 0, %v927_v1  ;;  %v223_v4 = vadd.s32 248, %v927_v1  ;;  %v940_v5 = vld [vmem:[%s183_s24] ss:$0 sm:$0xff]  ;;  %v206_v8 = vadd.s32 112, %v927_v1  ;;  %s189_s30 = scalar_lea.vmem %s1081_s3, %s1084_s13 }
  0x20   : > { %v261_v6 = vld [vmem:[%s186_s27] sm:$0x1]  ;;  %v207_v11 = vadd.s32 120, %v927_v1  ;;  %v220_v13 = vadd.s32 224, %v927_v1  ;;  %v221_v14 = vadd.s32 232, %v927_v1  ;;  %v204_v15 = vadd.s32 96, %v927_v1 }
  0x21   : > { %v262_v7 = vadd.s32 128, %v261_v6  ;;  %vm259_vm0 = vcmp.eq.s32.totalorder %v222_v2, %v940_v5  ;;  %vm260_vm1 = vcmp.eq.s32.totalorder %v223_v4, %v940_v5  ;;  %vm243_vm5 = vcmp.eq.s32.totalorder %v206_v8, %v940_v5  ;;  %v835_v47 = vld [vmem:[#allocation2 + $0x24] ss:$8 sps:$4 sm:$0xff]   ;;  %v837_v48 = vld [vmem:[#allocation2 + $0x54] ss:$8 sps:$4 sm:$0xff]  }
  0x22   : > { %vm244_vm8 = vcmp.eq.s32.totalorder %v207_v11, %v940_v5  ;;  %vm257_vm12 = vcmp.eq.s32.totalorder %v220_v13, %v940_v5  ;;  %v205_v17 = vadd.s32 104, %v927_v1  ;;  %vm258_vm15 = vcmp.eq.s32.totalorder %v221_v14, %v940_v5  ;;  %v839_v49 = vld [vmem:[#allocation2 + $0x20] ss:$8 sps:$4 sm:$0xff]   ;;  %v840_v50 = vld [vmem:[#allocation2 + $0x50] ss:$8 sps:$4 sm:$0xff]  }
  0x23   : > { %v944_v10 = vrot.slane %v262_v7, %v265_v3  ;;  %v218_v18 = vadd.s32 208, %v927_v1  ;;  %v219_v19 = vadd.s32 216, %v927_v1  ;;  %v202_v20 = vadd.s32 80, %v927_v1 }
  0x24   : > { %v203_v21 = vadd.s32 88, %v927_v1  ;;  %v216_v22 = vadd.s32 192, %v927_v1  ;;  %v217_v23 = vadd.s32 200, %v927_v1  ;;  %v200_v24 = vadd.s32 64, %v927_v1 }
  0x25   : > { %vm297_vm2 = vcmp.eq.s32.totalorder %v222_v2, %v944_v10  ;;  %vm298_vm3 = vcmp.eq.s32.totalorder %v223_v4, %v944_v10  ;;  %vm281_vm6 = vcmp.eq.s32.totalorder %v206_v8, %v944_v10  ;;  %vm282_vm9 = vcmp.eq.s32.totalorder %v207_v11, %v944_v10 }
  0x26   : > { %vm329_vm4 = vmor %vm259_vm0, %vm297_vm2  ;;  %vm295_vm13 = vcmp.eq.s32.totalorder %v220_v13, %v944_v10  ;;  %vm296_vm0 = vcmp.eq.s32.totalorder %v221_v14, %v944_v10  ;;  %v201_v25 = vadd.s32 72, %v927_v1  ;;  %v214_v26 = vadd.s32 176, %v927_v1 }
  0x27   : > { %vm330_vm7 = vmor %vm260_vm1, %vm298_vm3  ;;  %vm241_vm3 = vcmp.eq.s32.totalorder %v204_v15, %v940_v5  ;;  %v215_v27 = vadd.s32 184, %v927_v1  ;;  %v198_v28 = vadd.s32 48, %v927_v1  ;;  %v199_v29 = vadd.s32 56, %v927_v1 }
  0x28   : > { %vm715_vm10 = vmpackc.low %vm330_vm7, %vm329_vm4  ;;  %vm279_vm4 = vcmp.eq.s32.totalorder %v204_v15, %v944_v10  ;;  %vm280_vm7 = vcmp.eq.s32.totalorder %v205_v17, %v944_v10  ;;  %v212_v30 = vadd.s32 160, %v927_v1  ;;  %v213_v31 = vadd.s32 168, %v927_v1 }
  0x29   : > { %733 = vmatprep.subr.msk.bf16.mxu0 %vm715_vm10, %v882_v16  ;;  %785 = vmatprep.subr.msk.bf16.mxu1 %vm715_vm10, %v882_v16  ;;  %vm313_vm11 = vmor %vm243_vm5, %vm281_vm6  ;;  %vm242_vm6 = vcmp.eq.s32.totalorder %v205_v17, %v940_v5  ;;  %vm255_vm10 = vcmp.eq.s32.totalorder %v218_v18, %v940_v5  ;;  %v196_v32 = vadd.s32 32, %v927_v1  ;;  %v197_v33 = vadd.s32 40, %v927_v1 }
  0x2a   : > { %vm314_vm14 = vmor %vm244_vm8, %vm282_vm9  ;;  %v210_v34 = vadd.s32 144, %v927_v1  ;;  %v211_v35 = vadd.s32 152, %v927_v1  ;;  %v194_v36 = vadd.s32 16, %v927_v1  ;;  %v195_v37 = vadd.s32 24, %v927_v1 }
  0x2b   : > { %vm699_vm1 = vmpackc.low %vm314_vm14, %vm313_vm11  ;;  %vm293_vm11 = vcmp.eq.s32.totalorder %v218_v18, %v944_v10  ;;  %vm294_vm14 = vcmp.eq.s32.totalorder %v219_v19, %v944_v10  ;;  %v208_v38 = vadd.s32 128, %v927_v1  ;;  %v209_v39 = vadd.s32 136, %v927_v1 }
  0x2c   : > { %734 = vmatpush3.bf16.msk.msra.mxu0 %vm699_vm1, %v882_v16  ;;  %793 = vmatpush3.bf16.msk.msra.mxu1 %vm699_vm1, %v882_v16  ;;  %vm327_vm2 = vmor %vm257_vm12, %vm295_vm13  ;;  %vm256_vm13 = vcmp.eq.s32.totalorder %v219_v19, %v940_v5  ;;  %vm239_vm1 = vcmp.eq.s32.totalorder %v202_v20, %v940_v5  ;;  %v193_v40 = vadd.s32 8, %v927_v1 }
  0x2d   : > { %vm328_vm5 = vmor %vm258_vm15, %vm296_vm0 }
  0x2e   : > { %vm717_vm8 = vmpackc.low %vm328_vm5, %vm327_vm2  ;;  %vm277_vm2 = vcmp.eq.s32.totalorder %v202_v20, %v944_v10  ;;  %vm278_vm5 = vcmp.eq.s32.totalorder %v203_v21, %v944_v10 }
  0x2f   : > { %735 = vmatprep.subr.msk.bf16.mxu0 %vm717_vm8, %v882_v16  ;;  %786 = vmatprep.subr.msk.bf16.mxu1 %vm717_vm8, %v882_v16  ;;  %vm311_vm9 = vmor %vm241_vm3, %vm279_vm4  ;;  %vm240_vm4 = vcmp.eq.s32.totalorder %v203_v21, %v940_v5  ;;  %vm253_vm8 = vcmp.eq.s32.totalorder %v216_v22, %v940_v5 }
  0x30   : > { %vm312_vm12 = vmor %vm242_vm6, %vm280_vm7 }
  0x31   : > { %vm701_vm15 = vmpackc.low %vm312_vm12, %vm311_vm9  ;;  %vm291_vm9 = vcmp.eq.s32.totalorder %v216_v22, %v944_v10  ;;  %vm292_vm12 = vcmp.eq.s32.totalorder %v217_v23, %v944_v10 }
  0x32   : > { %736 = vmatpush3.bf16.msk.msra.mxu0 %vm701_vm15, %v882_v16  ;;  %794 = vmatpush3.bf16.msk.msra.mxu1 %vm701_vm15, %v882_v16  ;;  %vm325_vm0 = vmor %vm255_vm10, %vm293_vm11  ;;  %vm254_vm11 = vcmp.eq.s32.totalorder %v217_v23, %v940_v5  ;;  %vm237_vm15 = vcmp.eq.s32.totalorder %v200_v24, %v940_v5 }
  0x33   : > { %vm326_vm3 = vmor %vm256_vm13, %vm294_vm14 }
  0x34   : > { %vm719_vm6 = vmpackc.low %vm326_vm3, %vm325_vm0  ;;  %vm275_vm0 = vcmp.eq.s32.totalorder %v200_v24, %v944_v10  ;;  %vm276_vm3 = vcmp.eq.s32.totalorder %v201_v25, %v944_v10 }
  0x35   : > { %737 = vmatprep.subr.msk.bf16.mxu0 %vm719_vm6, %v882_v16  ;;  %787 = vmatprep.subr.msk.bf16.mxu1 %vm719_vm6, %v882_v16  ;;  %vm309_vm7 = vmor %vm239_vm1, %vm277_vm2  ;;  %vm238_vm2 = vcmp.eq.s32.totalorder %v201_v25, %v940_v5  ;;  %vm251_vm6 = vcmp.eq.s32.totalorder %v214_v26, %v940_v5 }
  0x36   : > { %vm310_vm10 = vmor %vm240_vm4, %vm278_vm5 }
  0x37   : > { %vm703_vm13 = vmpackc.low %vm310_vm10, %vm309_vm7  ;;  %vm289_vm7 = vcmp.eq.s32.totalorder %v214_v26, %v944_v10  ;;  %vm290_vm10 = vcmp.eq.s32.totalorder %v215_v27, %v944_v10 }
  0x38   : > { %738 = vmatpush3.bf16.msk.msra.mxu0 %vm703_vm13, %v882_v16  ;;  %795 = vmatpush3.bf16.msk.msra.mxu1 %vm703_vm13, %v882_v16  ;;  %vm323_vm14 = vmor %vm253_vm8, %vm291_vm9  ;;  %vm252_vm9 = vcmp.eq.s32.totalorder %v215_v27, %v940_v5  ;;  %vm235_vm13 = vcmp.eq.s32.totalorder %v198_v28, %v940_v5 }
  0x39   : > { %vm324_vm1 = vmor %vm254_vm11, %vm292_vm12 }
  0x3a   : > { %vm721_vm4 = vmpackc.low %vm324_vm1, %vm323_vm14  ;;  %vm273_vm14 = vcmp.eq.s32.totalorder %v198_v28, %v944_v10  ;;  %vm274_vm1 = vcmp.eq.s32.totalorder %v199_v29, %v944_v10 }
  0x3b   : > { %739 = vmatprep.subr.msk.bf16.mxu0 %vm721_vm4, %v882_v16  ;;  %788 = vmatprep.subr.msk.bf16.mxu1 %vm721_vm4, %v882_v16  ;;  %vm307_vm5 = vmor %vm237_vm15, %vm275_vm0  ;;  %vm236_vm0 = vcmp.eq.s32.totalorder %v199_v29, %v940_v5  ;;  %vm249_vm4 = vcmp.eq.s32.totalorder %v212_v30, %v940_v5 }
  0x3c   : > { %vm308_vm8 = vmor %vm238_vm2, %vm276_vm3 }
  0x3d   : > { %vm705_vm11 = vmpackc.low %vm308_vm8, %vm307_vm5  ;;  %vm287_vm5 = vcmp.eq.s32.totalorder %v212_v30, %v944_v10  ;;  %vm288_vm8 = vcmp.eq.s32.totalorder %v213_v31, %v944_v10 }
  0x3e   : > { %740 = vmatpush3.bf16.msk.msra.mxu0 %vm705_vm11, %v882_v16  ;;  %796 = vmatpush3.bf16.msk.msra.mxu1 %vm705_vm11, %v882_v16  ;;  %vm321_vm12 = vmor %vm251_vm6, %vm289_vm7  ;;  %vm250_vm7 = vcmp.eq.s32.totalorder %v213_v31, %v940_v5  ;;  %vm233_vm11 = vcmp.eq.s32.totalorder %v196_v32, %v940_v5 }
  0x3f   : > { %vm322_vm15 = vmor %vm252_vm9, %vm290_vm10 }
  0x40   : > { %vm723_vm2 = vmpackc.low %vm322_vm15, %vm321_vm12  ;;  %vm271_vm12 = vcmp.eq.s32.totalorder %v196_v32, %v944_v10  ;;  %vm272_vm15 = vcmp.eq.s32.totalorder %v197_v33, %v944_v10 }
  0x41   : > { %741 = vmatprep.subr.msk.bf16.mxu0 %vm723_vm2, %v882_v16  ;;  %789 = vmatprep.subr.msk.bf16.mxu1 %vm723_vm2, %v882_v16  ;;  %vm305_vm3 = vmor %vm235_vm13, %vm273_vm14  ;;  %vm234_vm14 = vcmp.eq.s32.totalorder %v197_v33, %v940_v5  ;;  %vm247_vm2 = vcmp.eq.s32.totalorder %v210_v34, %v940_v5 }
  0x42   : > { %vm306_vm6 = vmor %vm236_vm0, %vm274_vm1 }
  0x43   : > { %vm707_vm9 = vmpackc.low %vm306_vm6, %vm305_vm3  ;;  %vm285_vm3 = vcmp.eq.s32.totalorder %v210_v34, %v944_v10  ;;  %vm286_vm6 = vcmp.eq.s32.totalorder %v211_v35, %v944_v10 }
  0x44   : > { %742 = vmatpush3.bf16.msk.msra.mxu0 %vm707_vm9, %v882_v16  ;;  %797 = vmatpush3.bf16.msk.msra.mxu1 %vm707_vm9, %v882_v16  ;;  %vm319_vm10 = vmor %vm249_vm4, %vm287_vm5  ;;  %vm248_vm5 = vcmp.eq.s32.totalorder %v211_v35, %v940_v5  ;;  %vm231_vm9 = vcmp.eq.s32.totalorder %v194_v36, %v940_v5 }
  0x45   : > { %vm320_vm13 = vmor %vm250_vm7, %vm288_vm8 }
  0x46   : > { %vm725_vm0 = vmpackc.low %vm320_vm13, %vm319_vm10  ;;  %vm269_vm10 = vcmp.eq.s32.totalorder %v194_v36, %v944_v10  ;;  %vm270_vm13 = vcmp.eq.s32.totalorder %v195_v37, %v944_v10 }
  0x47   : > { %743 = vmatprep.subr.msk.bf16.mxu0 %vm725_vm0, %v882_v16  ;;  %790 = vmatprep.subr.msk.bf16.mxu1 %vm725_vm0, %v882_v16  ;;  %vm303_vm1 = vmor %vm233_vm11, %vm271_vm12  ;;  %vm232_vm12 = vcmp.eq.s32.totalorder %v195_v37, %v940_v5  ;;  %vm245_vm0 = vcmp.eq.s32.totalorder %v208_v38, %v940_v5 }
  0x48   : > { %vm304_vm4 = vmor %vm234_vm14, %vm272_vm15 }
  0x49   : > { %vm709_vm7 = vmpackc.low %vm304_vm4, %vm303_vm1  ;;  %vm283_vm1 = vcmp.eq.s32.totalorder %v208_v38, %v944_v10  ;;  %vm284_vm4 = vcmp.eq.s32.totalorder %v209_v39, %v944_v10 }
  0x4a   : > { %744 = vmatpush3.bf16.msk.msra.mxu0 %vm709_vm7, %v882_v16  ;;  %798 = vmatpush3.bf16.msk.msra.mxu1 %vm709_vm7, %v882_v16  ;;  %vm317_vm8 = vmor %vm247_vm2, %vm285_vm3  ;;  %vm246_vm3 = vcmp.eq.s32.totalorder %v209_v39, %v940_v5  ;;  %vm229_vm7 = vcmp.eq.s32.totalorder %v927_v1, %v940_v5 }
  0x4b   : > { %vm318_vm11 = vmor %vm248_vm5, %vm286_vm6 }
  0x4c   : > { %vm727_vm14 = vmpackc.low %vm318_vm11, %vm317_vm8  ;;  %vm267_vm8 = vcmp.eq.s32.totalorder %v927_v1, %v944_v10  ;;  %vm268_vm11 = vcmp.eq.s32.totalorder %v193_v40, %v944_v10 }
  0x4d   : > { %745 = vmatprep.subr.msk.bf16.mxu0 %vm727_vm14, %v882_v16  ;;  %791 = vmatprep.subr.msk.bf16.mxu1 %vm727_vm14, %v882_v16  ;;  %vm301_vm15 = vmor %vm231_vm9, %vm269_vm10  ;;  %vm230_vm10 = vcmp.eq.s32.totalorder %v193_v40, %v940_v5 }
  0x4e   : > { %vm302_vm2 = vmor %vm232_vm12, %vm270_vm13 }
  0x4f   : > { %vm711_vm5 = vmpackc.low %vm302_vm2, %vm301_vm15 }
  0x50   : > { %746 = vmatpush3.bf16.msk.msra.mxu0 %vm711_vm5, %v882_v16  ;;  %799 = vmatpush3.bf16.msk.msra.mxu1 %vm711_vm5, %v882_v16  ;;  %vm315_vm6 = vmor %vm245_vm0, %vm283_vm1 }
  0x51   : > { %vm316_vm9 = vmor %vm246_vm3, %vm284_vm4 }
  0x52   : > { %vm729_vm12 = vmpackc.low %vm316_vm9, %vm315_vm6 }
  0x53   : > { %747 = vmatprep.subr.msk.bf16.mxu0 %vm729_vm12, %v882_v16  ;;  %792 = vmatprep.subr.msk.bf16.mxu1 %vm729_vm12, %v882_v16  ;;  %vm299_vm13 = vmor %vm229_vm7, %vm267_vm8 }
  0x54   : > { %vm300_vm14 = vmor %vm230_vm10, %vm268_vm11 }
  0x55   : > { %vm713_vm15 = vmpackc.low %vm300_vm14, %vm299_vm13 }
  0x56   : > { %748 = vmatpush3.bf16.msk.msra.mxu0 %vm713_vm15, %v882_v16  ;;  %800 = vmatpush3.bf16.msk.msra.mxu1 %vm713_vm15, %v882_v16 }
  0x59   : > { %516 = vmatmul.mubr.bf16.vlgmr.msra.gmra.mxu0 %v823_v41  ;;  %540 = vmatmul.mubr.bf16.vlgmr.msra.gmra.mxu1 %v826_v42 }
  0x5a   : > { %523 = vmatprep.mubr.bf16.mxu0 %v829_v43  ;;  %547 = vmatprep.mubr.bf16.mxu1 %v831_v44 }
  0x61   : > { %524 = vmatmul.mubr.bf16.gmra.mxu0 %v833_v45  ;;  %548 = vmatmul.mubr.bf16.gmra.mxu1 %v834_v46 }
  0x62   : > { %531 = vmatprep.mubr.bf16.mxu0 %v835_v47  ;;  %555 = vmatprep.mubr.bf16.mxu1 %v837_v48 }
  0x69   : > { %532 = vmatmul.mubr.bf16.gmra.mxu0 %v839_v49  ;;  %556 = vmatmul.mubr.bf16.gmra.mxu1 %v840_v50 }
 0x119   : > { %v749_v51 = vpop.f32.mrf.mxu0  ;;  %v767_v52 = vpop.f32.mrf.mxu1 }
 0x11b   : > { %v750_v53 = vpop.f32.mrf.mxu0  ;;  %v768_v54 = vpop.f32.mrf.mxu1 }
 0x11c   : > { %v751_v11 = vadd.f32 %v750_v53, %v749_v51  ;;  %v769_v12 = vadd.f32 %v768_v54, %v767_v52 }
 0x11d   : > { %v752_v55 = vpop.f32.mrf.mxu0  ;;  %v770_v56 = vpop.f32.mrf.mxu1 }
 0x11e   : > { %v564_v24 = vadd.f32 %v769_v12, %v751_v11 }
 0x11f   : > { %v753_v57 = vpop.f32.mrf.mxu0  ;;  %v771_v58 = vpop.f32.mrf.mxu1 }
 0x120   : > { %v754_v3 = vadd.f32 %v753_v57, %v752_v55  ;;  %v772_v4 = vadd.f32 %v771_v58, %v770_v56 }
 0x121   : > { %v755_v59 = vpop.f32.mrf.mxu0  ;;  %v773_v60 = vpop.f32.mrf.mxu1 }
 0x122   : > { %v565_v15 = vadd.f32 %v772_v4, %v754_v3 }
 0x123   : > { %v756_v61 = vpop.f32.mrf.mxu0  ;;  %v774_v62 = vpop.f32.mrf.mxu1 }
 0x124   : > { %v757_v18 = vadd.f32 %v756_v61, %v755_v59  ;;  %v775_v19 = vadd.f32 %v774_v62, %v773_v60 }
 0x125   : > { %v758_v63 = vpop.f32.mrf.mxu0  ;;  %v776_v0 = vpop.f32.mrf.mxu1 }
 0x126   : > { %v566_v28 = vadd.f32 %v775_v19, %v757_v18 }
 0x127   : > { %v759_v1 = vpop.f32.mrf.mxu0  ;;  %v777_v2 = vpop.f32.mrf.mxu1 }
 0x128   : > { %v760_v7 = vadd.f32 %v759_v1, %v758_v63  ;;  %v778_v8 = vadd.f32 %v777_v2, %v776_v0 }
 0x129   : > { %v761_v5 = vpop.f32.mrf.mxu0  ;;  %v779_v6 = vpop.f32.mrf.mxu1 }
 0x12a   : > { %v567_v20 = vadd.f32 %v778_v8, %v760_v7 }
 0x12b   : > { %v762_v9 = vpop.f32.mrf.mxu0  ;;  %v780_v10 = vpop.f32.mrf.mxu1 }
 0x12c   : > { %v763_v13 = vadd.f32 %v762_v9, %v761_v5  ;;  %v781_v14 = vadd.f32 %v780_v10, %v779_v6  ;;  %v570_v29 = vmul.f32 %v567_v20, %v564_v24 }
 0x12d   : > { %v764_v16 = vpop.f32.mrf.mxu0  ;;  %v782_v17 = vpop.f32.mrf.mxu1 }
 0x12e   : > { %v568_v21 = vadd.f32 %v781_v14, %v763_v13 }
 0x12f   : > { %v765_v22 = vpop.f32.mrf.mxu0  ;;  %v783_v23 = vpop.f32.mrf.mxu1 }
 0x130   : > { %v571_v25 = vmul.f32 %v568_v21, %v565_v15  ;;  %v766_v26 = vadd.f32 %v765_v22, %v764_v16  ;;  %v784_v27 = vadd.f32 %v783_v23, %v782_v17 }
 0x132   : > { %v569_v30 = vadd.f32 %v784_v27, %v766_v26  ;;  %v573_v31 = vadd.f32 %v571_v25, %v570_v29 }
 0x134   : > { %v572_v32 = vmul.f32 %v569_v30, %v566_v28 }
 0x136   : > { %v574_v33 = vadd.f32 %v573_v31, %v572_v32 }
 0x138   : > { %v575_v34 = vrot.slane %v574_v33, 4 }
 0x13a   : > { %v576_v35 = vadd.f32 %v575_v34, %v574_v33 }
 0x13c   : > { %v577_v36 = vrot.slane %v576_v35, 2 }
 0x13e   : > { %v578_v37 = vadd.f32 %v577_v36, %v576_v35 }
 0x140   : > { %v579_v38 = vrot.slane %v578_v37, 1 }
 0x142   : > { %v580_v39 = vadd.f32 %v579_v38, %v578_v37 }
 0x144   : > { %581 = vst [vmem:[%s189_s30] sm:$0x1] %v580_v39 }
 0x145 PF: > { %s14_s12 = sadd.s32 1, %s877_s12  }
 0x146   : > { %p11_p1 = scmp.ge.s32.totalorder %s14_s12, 5  }
 0x148   :  { %13 = sbr.rel (!%p11_p1) target bundleno = 1 (0x1), region = 70 }
 0x14d   :  { %599 = vsyncpa [#allocation3], 1 }
 0x14e   :  { %601 = vsyncpa [#allocation3 + $0x1], 1 }

</bundles_post_ra>
